<compile_context>
chip_gen: v7x
topology: tpu7x:2x2x1
jax: 0.10.0
libtpu: 0.0.40
codegen_flags: <defaults>
</compile_context>

<pallas_src>
import jax
import jax.numpy as jnp
from jax import lax
from jax.experimental import pallas as pl
from jax.experimental.pallas import tpu as pltpu

_LANE = 128


def _cdiv(a, b):
    return -(-a // b)


def _round_up(n, m):
    return _cdiv(n, m) * m


def _mlp_kernel(x_ref, w1t_ref, b1_ref, w2_ref, b2_ref, o_ref):
    # First layer on the MXU as an NT matmul:
    #   (hidden, d_in) . (tb, d_in)^T -> (hidden, tb) f32
    # Keeping the batch on the lane (minor) axis means every downstream
    # VPU/EUP op runs on full 128-wide vregs (8x less tanh/bias work than the
    # batch-major orientation), and the big-operand reorientation is handled
    # inside the matmul lowering instead of as an extra HBM pass in the wrapper.
    ht = lax.dot_general(
        w1t_ref[...], x_ref[...],
        dimension_numbers=(((1,), (1,)), ((), ())),
        preferred_element_type=jnp.float32)
    ht = jnp.tanh(ht + b1_ref[...])                  # f32 bias + tanh (EUP)
    # Second layer (hidden -> 1) off the MXU: VPU multiply + sublane reduce
    # (avoids a 1/128-utilized N=1 vmatmul), plus the SMEM scalar bias.
    y = jnp.sum(ht * w2_ref[...], axis=0, keepdims=True) + b2_ref[0, 0]
    o_ref[0] = y.astype(o_ref.dtype)                 # lane-dense, unmasked store


def distributed_net_forward(x, w1, b1, w2, b2, *, tile_b=16 * 1024):
    """Forward pass of DistributedNet.

    x:  (B, d_in) f32      w1: (d_in, hidden)   b1: (1, hidden)
    w2: (hidden, 1)        b2: (1, 1)           returns (B, 1) f32
    """
    B, d_in = x.shape
    hidden = w1.shape[1]

    # --- batch tiling --------------------------------------------------------
    # Balanced, lane-aligned tiles; at least 2 grid steps once B >= 256 so a
    # v7x megacore can shard the batch over its two TensorCores (neutral on
    # v5e/v6e).  tile_b=16K keeps per-buffer VMEM at d_in-lane-padded
    # tb*512 B = 8 MiB, well inside the explicit 40 MiB scoped-VMEM limit on
    # every generation (v7x: 64 MiB physical; v5e/v6e: 128 MiB physical).
    n = max(1, _cdiv(B, tile_b))
    if B >= 2 * _LANE:
        n = max(n, 2)
    tb = _round_up(_cdiv(B, n), _LANE)
    g = _cdiv(B, tb)
    bp = g * tb

    # x is consumed directly as (tb, d_in) f32 blocks -> no cast/transpose
    # passes over x in the wrapper.  Only a ragged batch needs a pad copy.
    # TODO(synk): drop this pad as well (rely on Pallas partial-block padding;
    # padded columns are independent and sliced off) if unspecified padded
    # input reads are acceptable here.
    x_in = x if bp == B else jnp.pad(x, ((0, bp - B), (0, 0)))

    w1t = w1.T.astype(jnp.float32)                      # (hidden, d_in)
    b1c = b1.reshape(hidden, 1).astype(jnp.float32)     # (hidden, 1)
    w2c = w2.reshape(hidden, 1).astype(jnp.float32)     # (hidden, 1)
    b2r = b2.reshape(1, 1).astype(jnp.float32)          # (1, 1) -> SMEM scalar

    cost = pl.CostEstimate(
        flops=2 * bp * d_in * hidden + 4 * bp * hidden,
        transcendentals=bp * hidden,
        bytes_accessed=bp * d_in * 4 + bp * 4 + hidden * (d_in + 2) * 4 + 4,
    )

    out = pl.pallas_call(
        _mlp_kernel,
        out_shape=jax.ShapeDtypeStruct((g, 1, tb), jnp.float32),
        grid_spec=pltpu.PrefetchScalarGridSpec(
            num_scalar_prefetch=0,
            grid=(g,),
            in_specs=[
                pl.BlockSpec((tb, d_in), lambda i: (i, 0)),      # x tile (pipelined)
                pl.BlockSpec((hidden, d_in), lambda i: (0, 0)),  # weights: constant
                pl.BlockSpec((hidden, 1), lambda i: (0, 0)),     #   index maps -> DMA'd
                pl.BlockSpec((hidden, 1), lambda i: (0, 0)),     #   once, stay resident
                pl.BlockSpec(memory_space=pltpu.MemorySpace.SMEM),  # b2 scalar
            ],
            out_specs=pl.BlockSpec((1, 1, tb), lambda i: (i, 0, 0)),
        ),
        compiler_params=pltpu.CompilerParams(
            dimension_semantics=("parallel",),      # v7x: shard batch tiles over 2 TCs
            vmem_limit_bytes=40 * 1024 * 1024,      # (tb,16) f32 lane-pads 8x in VMEM
        ),
        cost_estimate=cost,
    )(x_in, w1t, b1c, w2c, b2r)

    # (g, 1, tb) row-major flatten == padded batch order (depends on the x/out
    # index_maps partitioning the batch contiguously in grid order).
    return out.reshape(bp, 1)[:B]


def reference_forward(x, w1, b1, w2, b2):
    h = jnp.tanh(x @ w1 + b1)
    return h @ w2 + b2


if __name__ == "__main__":
    key = jax.random.PRNGKey(0)
    k_x, k_w1, k_b1, k_w2, k_b2 = jax.random.split(key, 5)

    input_size = 16   # e.g. number of proximity sensors
    hidden = 10       # fixed by the module
    out_dim = 1       # fixed by the module

    lim1 = 1.0 / (input_size ** 0.5)
    lim2 = 1.0 / (hidden ** 0.5)
    w1 = jax.random.uniform(k_w1, (input_size, hidden), jnp.float32, -lim1, lim1)
    b1 = jax.random.uniform(k_b1, (1, hidden), jnp.float32, -lim1, lim1)
    w2 = jax.random.uniform(k_w2, (hidden, out_dim), jnp.float32, -lim2, lim2)
    b2 = jax.random.uniform(k_b2, (1, out_dim), jnp.float32, -lim2, lim2)

    # batch=256 exercises the multi-tile path (2 grid steps, no padding);
    # batch=8 exercises the tiny/ragged path (pad to one 128-lane tile).
    for batch in (256, 8):
        x = jax.random.normal(k_x, (batch, input_size), dtype=jnp.float32)
        y = distributed_net_forward(x, w1, b1, w2, b2)
        jax.block_until_ready(y)
        assert y.shape == (batch, out_dim)

        # f32 operands end-to-end; tolerance leaves margin for MXU pass
        # decomposition of the f32 matmul (observed error is far smaller).
        y_ref = reference_forward(x, w1, b1, w2, b2)
        assert jnp.allclose(y, y_ref, atol=5e-3, rtol=5e-3), float(
            jnp.max(jnp.abs(y - y_ref)))

    print("KERNEL_OK")
</pallas_src>

<mosaic_0001>
module attributes {stable_mosaic.version = 11 : i64} {
  func.func @_mlp_kernel(%arg0: i32, %arg1: memref<128x16xf32, #tpu.memory_space<vmem>>, %arg2: memref<10x16xf32, #tpu.memory_space<vmem>>, %arg3: memref<10x1xf32, #tpu.memory_space<vmem>>, %arg4: memref<10x1xf32, #tpu.memory_space<vmem>>, %arg5: memref<1x1xf32, #tpu.memory_space<smem>>, %arg6: memref<1x1x128xf32, #tpu.memory_space<vmem>>) attributes {dimension_semantics = [#tpu.dimension_semantics<parallel>], iteration_bounds = array<i64: 2>, scalar_prefetch = 0 : i64, scratch_operands = 0 : i64, tpu.core_type = #tpu.core_type<tc>, window_params = [{transform_indices = @transform_0, window_bounds = array<i64: 128, 16>}, {pipeline_mode = #tpu.pipeline_mode<synchronous>, transform_indices = @transform_1, window_bounds = array<i64: 10, 16>}, {pipeline_mode = #tpu.pipeline_mode<synchronous>, transform_indices = @transform_2, window_bounds = array<i64: 10, 1>}, {pipeline_mode = #tpu.pipeline_mode<synchronous>, transform_indices = @transform_3, window_bounds = array<i64: 10, 1>}, {transform_indices = @transform_4, window_bounds = array<i64: 1, 1>}, {transform_indices = @transform_5, window_bounds = array<i64: 1, 1, 128>}]} {
    %c0 = arith.constant 0 : index
    %c0_0 = arith.constant 0 : index
    %0 = vector.load %arg2[%c0, %c0_0] : memref<10x16xf32, #tpu.memory_space<vmem>>, vector<10x16xf32>
    %c0_1 = arith.constant 0 : index
    %c0_2 = arith.constant 0 : index
    %1 = vector.load %arg1[%c0_1, %c0_2] : memref<128x16xf32, #tpu.memory_space<vmem>>, vector<128x16xf32>
    %cst = arith.constant dense<0.000000e+00> : vector<10x128xf32>
    %2 = tpu.matmul %0, %1, %cst {dimension_numbers = #tpu.dot_dimension_numbers<[1], [1], [0], [0], [0, 0, 1, 0], [], []>} : vector<10x16xf32>, vector<128x16xf32>, vector<10x128xf32> -> vector<10x128xf32>
    %c0_3 = arith.constant 0 : index
    %c0_4 = arith.constant 0 : index
    %3 = vector.load %arg3[%c0_3, %c0_4] : memref<10x1xf32, #tpu.memory_space<vmem>>, vector<10x1xf32>
    %4 = vector.broadcast %3 : vector<10x1xf32> to vector<10x128xf32>
    %5 = arith.addf %2, %4 : vector<10x128xf32>
    %6 = math.tanh %5 : vector<10x128xf32>
    %c0_5 = arith.constant 0 : index
    %c0_6 = arith.constant 0 : index
    %7 = vector.load %arg4[%c0_5, %c0_6] : memref<10x1xf32, #tpu.memory_space<vmem>>, vector<10x1xf32>
    %8 = vector.broadcast %7 : vector<10x1xf32> to vector<10x128xf32>
    %9 = arith.mulf %6, %8 : vector<10x128xf32>
    %cst_7 = arith.constant dense<0.000000e+00> : vector<128xf32>
    %10 = vector.multi_reduction <add>, %9, %cst_7 [0] : vector<10x128xf32> to vector<128xf32>
    %11 = vector.shape_cast %10 : vector<128xf32> to vector<1x128xf32>
    %c0_8 = arith.constant 0 : index
    %c0_9 = arith.constant 0 : index
    %12 = memref.load %arg5[%c0_8, %c0_9] : memref<1x1xf32, #tpu.memory_space<smem>>
    %13 = vector.broadcast %12 : f32 to vector<1x128xf32>
    %14 = arith.addf %11, %13 : vector<1x128xf32>
    %c0_10 = arith.constant 0 : index
    %c0_11 = arith.constant 0 : index
    %c0_12 = arith.constant 0 : index
    %15 = vector.load %arg6[%c0_10, %c0_11, %c0_12] : memref<1x1x128xf32, #tpu.memory_space<vmem>>, vector<1x1x128xf32>
    %16 = vector.shape_cast %15 : vector<1x1x128xf32> to vector<1x128xf32>
    %17 = vector.shape_cast %14 : vector<1x128xf32> to vector<1x1x128xf32>
    tpu.vector_store %arg6[%c0_10, %c0_11, %c0_12], %17 {strides = array<i32>} : memref<1x1x128xf32, #tpu.memory_space<vmem>>, vector<1x1x128xf32>,
    return
  }
  func.func @transform_0(%arg0: i32) -> (i32, i32) {
    %c0_i32 = arith.constant 0 : i32
    %c0_i32_0 = arith.constant 0 : i32
    return %arg0, %c0_i32 : i32, i32
  }
  func.func @transform_1(%arg0: i32) -> (i32, i32) {
    %c0_i32 = arith.constant 0 : i32
    %c0_i32_0 = arith.constant 0 : i32
    %c0_i32_1 = arith.constant 0 : i32
    return %c0_i32, %c0_i32_0 : i32, i32
  }
  func.func @transform_2(%arg0: i32) -> (i32, i32) {
    %c0_i32 = arith.constant 0 : i32
    %c0_i32_0 = arith.constant 0 : i32
    %c0_i32_1 = arith.constant 0 : i32
    return %c0_i32, %c0_i32_0 : i32, i32
  }
  func.func @transform_3(%arg0: i32) -> (i32, i32) {
    %c0_i32 = arith.constant 0 : i32
    %c0_i32_0 = arith.constant 0 : i32
    %c0_i32_1 = arith.constant 0 : i32
    return %c0_i32, %c0_i32_0 : i32, i32
  }
  func.func @transform_4(%arg0: i32) -> (i32, i32) {
    %c0_i32 = arith.constant 0 : i32
    %c0_i32_0 = arith.constant 0 : i32
    %c0_i32_1 = arith.constant 0 : i32
    return %c0_i32, %c0_i32_0 : i32, i32
  }
  func.func @transform_5(%arg0: i32) -> (i32, i32, i32) {
    %c0_i32 = arith.constant 0 : i32
    %c0_i32_0 = arith.constant 0 : i32
    %c0_i32_1 = arith.constant 0 : i32
    return %arg0, %c0_i32, %c0_i32_0 : i32, i32, i32
  }
}

</mosaic_0001>

<bundles_post_ra>
// kernel: tpu_custom_call.1
= control target key start
LH: loop header
LB: loop body
LE: loop exit
PB: predicated region body
PF: predicated region fallthrough
CT: control target
= control target key end

     0   :  { %s930_s0 = inlined_call_operand.vmem [shape: f32[256,16], index: 0, kind: input, shape index: {}]   ;;  %s931_s1 = inlined_call_operand.vmem [shape: f32[10,16], index: 1, kind: input, shape index: {}]   ;;  %s932_s2 = inlined_call_operand.vmem [shape: f32[10,1], index: 2, kind: input, shape index: {}]   ;;  %s933_s3 = inlined_call_operand.vmem [shape: f32[10,1], index: 3, kind: input, shape index: {}]   ;;  %s934_s4 = inlined_call_operand.<no memory space> [shape: f32[1,1], index: 4, kind: input, shape index: {}]   ;;  %s935_s5 = inlined_call_operand.hbm [shape: f32[2,1,128], index: 5, kind: output, shape index: {}]  }
   0x1   :  { %10 = sst [smem:[#allocation2]] %s934_s4 }
   0x2   :  { %11 = vsyncpa [#allocation4], 0 }
   0x3   :  { %13 = vsyncpa [#allocation4 + $0x1], 0  ;;  %s755_s20 = smov 0   ;;  %s757_s21 = smov 0  }
   0x4   :  { %s759_s22 = smov 0   ;;  %s761_s23 = smov 0  }
   0x5 LB: > { %s481_s4 = sadd.s32 4294967295, %s718_s23   ;;  %s482_s24 = sadd.s32 4294967294, %s718_s23   ;;  %s718_s23 = sphi %s761_s23, %s943_s23   ;;  %s714_s22 = sphi %s759_s22, %s942_s22   ;;  %s710_s21 = sphi %s757_s21, %s941_s21   ;;  %s706_s20 = sphi %s755_s20, %s940_s20  }
   0x6   : > { %s778_s25 = sadd.s32 1, %s718_s23   ;;  %s136_s26 = sadd.s32 1, %s714_s22 }
   0x7   : > { %s133_s27 = ssub.s32 %s718_s23, %s778_s25  ;;  %p146_p0 = scmp.ne.s32.totalorder %s714_s22, %s710_s21 }
   0x8   : > { %p134_p1 = scmp.eq.s32.totalorder %s133_s27, 0  ;;  %p147_p2 = scmp.eq.s32.totalorder %s481_s4, 1 }
   0x9   : > { %p152_p3 = scmp.ne.s32.totalorder %s710_s21, %s706_s20  ;;  %p153_p4 = scmp.eq.s32.totalorder %s482_s24, 1 }
   0xa   : > { %s788_s28 = scalar_select %p134_p1, %s714_s22, %s136_s26  }
   0xb   : > { %p790_p5 = por %p147_p2, %p146_p0  ;;  %p794_p6 = por %p153_p4, %p152_p3 }
   0xc   : > { %p485_p7 = scmp.ge.s32.totalorder %s718_s23, 1  ;;  %p192_p8 = scmp.lt.s32.totalorder %s718_s23, 3 }
   0xe   : > { %p193_p9 = pnand %p485_p7, %p192_p8 }
   0xf   : > { %s800_s6 = sshll.u32 (!%p193_p9), %s481_s4, 4  ;;  %vm255_vm0 = vcmask (!%p193_p9), 130048   ;;  %v225_v0 = vld [vmem:[%s931_s1] sm:$0xff] (!%p193_p9)  ;;  %v720_v1 = vmov (!%p193_p9), 0   ;;  %v244_v2 = vld [vmem:[%s932_s2 + $0x8] sm:$0x3] (!%p193_p9) }
  0x10   : > { %196 = sbr.rel (%p193_p9) target bundleno = 352 (0x160), region = 40  ;;  %p220_p10 = scmp.lt.s32.totalorder (!%p193_p9), %s800_s6, 31  ;;  %559 = vmatprep.mubr.msk.f32.mxu0 (!%p193_p9), %vm255_vm0, %v225_v0  ;;  %650 = vset.pattern.permute.xlu0 (!%p193_p9), %v720_v1  ;;  %v388_v3 = vld [vmem:[%s933_s3 + $0x8] sm:$0x3] (!%p193_p9)  ;;  %v243_v4 = vld [vmem:[%s932_s2] sm:$0xff] (!%p193_p9)  ;;  %vm827_vm1 = vmpackc.low (!%p193_p9), %vm255_vm0, %vm255_vm0  ;;  %vm401_vm2 = vcmask (!%p193_p9), 1041408  }
  0x11   : > { %252 = vperm.xlu0 (!%p193_p9), %650, %v244_v2   ;;  %651 = vset.pattern.permute.xlu1 (!%p193_p9), %v720_v1  ;;  %v387_v5 = vld [vmem:[%s933_s3] sm:$0xff] (!%p193_p9)  ;;  %v226_v31 = vld [vmem:[%s931_s1 + $0x8] sm:$0x3] (!%p193_p9)  ;;  %s410_s7 = sld [smem:[#allocation2]] (!%p193_p9)  ;;  %s217_s8 = sand.u32 (!%p193_p9), 1, %s710_s21  }
  0x12   : > { %396 = vperm.xlu1 (!%p193_p9), %651, %v388_v3   ;;  %s218_s9 = scalar_lea.vmem (!%p193_p9), [#allocation3], %s217_s8  ;;  %s415_s14 = scalar_lea.sflag (!%p193_p9), [#allocation4], %s217_s8 }
  0x13   : > { %s427_s10 = sshll.u32 (!%p193_p9), %s218_s9, 4  ;;  %s721_s16 = smov (!%p193_p9), [#allocation3]   ;;  %s890_s10 = int_to_ptr.vmem [resolvable:$true] %s427_s10 }
  0x14   : > { %s656_s15 = scalar_lea.vmem (!%p193_p9), %s890_s10, 16  ;;  %s660_s17 = sshll.u32 (!%p193_p9), %s721_s16, 4  ;;  %s661_s17 = int_to_ptr.vmem [resolvable:$false] %s660_s17 }
  0x15   : > { %247 = vperm.xlu0 (!%p193_p9), %650, %v243_v4   ;;  %p657_p11 = scmp.ne.s32.totalorder (!%p193_p9), %s890_s10, %s656_s15  ;;  %p663_p0 = scmp.lt.s32.totalorder (!%p193_p9), %s890_s10, %s661_s17 }
  0x16   : > { %391 = vperm.xlu1 (!%p193_p9), %651, %v387_v5  }
  0x17   : > { %s221_s13 = scalar_select %p220_p10, %s800_s6, 31  ;;  %v411_v51 = vstv %s410_s7 }
  0x18   : > { %p658_p12 = pnand %p657_p11, %p790_p5 }
  0x19   : > { %s487_s18 = sshll.u32 %s221_s13, 3  ;;  %s888_s13 = scalar_lea.hbm %s935_s5, %s800_s6 }
  0x1a   : > { %s823_s24 = scalar_lea.vmem %s930_s0, %s487_s18  ;;  %p659_p13 = pneg %p658_p12 }
  0x1b   : > { %v227_v7 = vld [vmem:[%s823_s24] sm:$0xff]  ;;  %v228_v8 = vld [vmem:[%s823_s24 + $0x8] sm:$0xff]  ;;  %v229_v9 = vld [vmem:[%s823_s24 + $0x10] sm:$0xff]  ;;  %s662_s18 = scalar_lea.vmem %s661_s17, 32 }
  0x1c   : > { %v562_v10 = vpack.c.bf16 %v228_v8, %v227_v7  ;;  %v230_v11 = vld [vmem:[%s823_s24 + $0x18] sm:$0xff]  ;;  %v231_v13 = vld [vmem:[%s823_s24 + $0x20] sm:$0xff]  ;;  %v232_v14 = vld [vmem:[%s823_s24 + $0x28] sm:$0xff]  ;;  %p664_p1 = scmp.lt.s32.totalorder %s662_s18, %s656_s15 }
  0x1d   : > { %v568_v12 = vpack.c.bf16 %v230_v11, %v229_v9  ;;  %v574_v15 = vpack.c.bf16 %v232_v14, %v231_v13  ;;  %v233_v16 = vld [vmem:[%s823_s24 + $0x30] sm:$0xff]  ;;  %v234_v17 = vld [vmem:[%s823_s24 + $0x38] sm:$0xff]  ;;  %v235_v19 = vld [vmem:[%s823_s24 + $0x40] sm:$0xff] }
  0x1e   : > { %564 = vmatprep.subr.msk.bf16.mxu0 %vm827_vm1, %v562_v10  ;;  %v580_v18 = vpack.c.bf16 %v234_v17, %v233_v16  ;;  %v236_v20 = vld [vmem:[%s823_s24 + $0x48] sm:$0xff]  ;;  %v237_v22 = vld [vmem:[%s823_s24 + $0x50] sm:$0xff]  ;;  %v238_v23 = vld [vmem:[%s823_s24 + $0x58] sm:$0xff]  ;;  %p665_p2 = por %p664_p1, %p663_p0 }
  0x1f   : > { %567 = vmatpush3.bf16.xpose.msk.msra.mxu0 %vm827_vm1, %v562_v10  ;;  %v586_v21 = vpack.c.bf16 %v236_v20, %v235_v19  ;;  %v592_v24 = vpack.c.bf16 %v238_v23, %v237_v22  ;;  %v239_v25 = vld [vmem:[%s823_s24 + $0x60] sm:$0xff]  ;;  %v240_v26 = vld [vmem:[%s823_s24 + $0x68] sm:$0xff]  ;;  %v241_v28 = vld [vmem:[%s823_s24 + $0x70] sm:$0xff] }
  0x20   : > { %570 = vmatprep.subr.msk.bf16.mxu0 %vm827_vm1, %v568_v12  ;;  %v598_v27 = vpack.c.bf16 %v240_v26, %v239_v25  ;;  %v242_v29 = vld [vmem:[%s823_s24 + $0x78] sm:$0xff]  ;;  %p666_p3 = pnand %p665_p2, %p659_p13 }
  0x21   : > { %v604_v30 = vpack.c.bf16 %v242_v29, %v241_v28 }
  0x27   : > { %573 = vmatpush3.bf16.xpose.msk.msra.mxu0 %vm827_vm1, %v568_v12 }
  0x28   : > { %576 = vmatprep.subr.msk.bf16.mxu0 %vm827_vm1, %v574_v15 }
  0x2f   : > { %579 = vmatpush3.bf16.xpose.msk.msra.mxu0 %vm827_vm1, %v574_v15 }
  0x30   : > { %582 = vmatprep.subr.msk.bf16.mxu0 %vm827_vm1, %v580_v18 }
  0x37   : > { %585 = vmatpush3.bf16.xpose.msk.msra.mxu0 %vm827_vm1, %v580_v18 }
  0x38   : > { %588 = vmatprep.subr.msk.bf16.mxu0 %vm827_vm1, %v586_v21 }
  0x3f   : > { %591 = vmatpush3.bf16.xpose.msk.msra.mxu0 %vm827_vm1, %v586_v21 }
  0x40   : > { %594 = vmatprep.subr.msk.bf16.mxu0 %vm827_vm1, %v592_v24 }
  0x47   : > { %597 = vmatpush3.bf16.xpose.msk.msra.mxu0 %vm827_vm1, %v592_v24 }
  0x48   : > { %600 = vmatprep.subr.msk.bf16.mxu0 %vm827_vm1, %v598_v27 }
  0x4f   : > { %603 = vmatpush3.bf16.xpose.msk.msra.mxu0 %vm827_vm1, %v598_v27 }
  0x50   : > { %606 = vmatprep.subr.msk.bf16.mxu0 %vm827_vm1, %v604_v30 }
  0x57   : > { %609 = vmatpush3.bf16.xpose.msk.msra.mxu0 %vm827_vm1, %v604_v30 }
  0x5e   : > { %560 = vmatmul.mubr.msk.f32.vlgmr.msra.gmra.mrb[0].mxu0 %vm255_vm0, %v226_v31 }
  0x90   : > { %v253_v32 = vpop.permute.xlu0 %252 }
  0x91   : > { %v397_v38 = vpop.permute.xlu1 %396 }
  0x94   : > { %v248_v34 = vpop.permute.xlu0 %247 }
  0x95   : > { %v392_v42 = vpop.permute.xlu1 %391 }
 0x131   : > { %v561_v33 = vpop.f32.mrb[0].mxu0 }
 0x132   : > { %v382_v35 = vadd.f32 %v561_v33, %v253_v32  ;;  %v376_v36 = vpop.f32.mrb[1].mxu0 }
 0x133   : > { %v377_v37 = vadd.f32 %v376_v36, %v248_v34 }
 0x134   : > { %652 = vtanh.f32 %v382_v35 }
 0x135   : > { %654 = vtanh.f32 %v377_v37 }
 0x13e   : > { %v653_v39 = vpop.eup %652 }
 0x13f   : > { %v655_v40 = vpop.eup %654  ;;  %v400_v41 = vmul.f32 %v653_v39, %v397_v38 }
 0x140   : > { %v399_v43 = vmul.f32 %v655_v40, %v392_v42 }
 0x141   : > { %v402_v44 = vsel %vm401_vm2, %v400_v41, 0.0 }
 0x142   : > { %v403_v45 = vadd.f32 %v402_v44, %v399_v43 }
 0x144   : > { %v404_v46 = vrot.slane %v403_v45, 4 }
 0x146   : > { %v405_v47 = vadd.f32 %v404_v46, %v403_v45 }
 0x148   : > { %v406_v48 = vrot.slane %v405_v47, 2 }
 0x14a   : > { %v407_v49 = vadd.f32 %v406_v48, %v405_v47 }
 0x14c   : > { %v408_v50 = vrot.slane %v407_v49, 1 }
 0x14e   : > { %v409_v52 = vadd.f32 %v408_v50, %v407_v49 }
 0x150   : > { %v412_v53 = vadd.f32 %v411_v51, %v409_v52 }
 0x152   : > { %413 = vst [vmem:[%s218_s9] sm:$0x1] %v412_v53 }
 0x153   : > { %669 = shalt.err (!%p666_p3)
}
 0x154   : > { %s670_s6 = scalar_lea.hbm %s888_s13, 16  ;;  %s674_s24 = scalar_lea.hbm %s935_s5, 32 }
 0x155   : > { %p671_p4 = scmp.ne.s32.totalorder %s888_s13, %s670_s6  ;;  %p675_p9 = scmp.lt.u32.totalorder %s888_s13, %s935_s5 }
 0x156   : > { %p676_p10 = scmp.lt.u32.totalorder %s674_s24, %s670_s6  ;;  %p678_p12 = scmp.lt.u32.totalorder %s670_s6, %s888_s13 }
 0x157   : > { %p672_p7 = pnand %p671_p4, %p790_p5 }
 0x158   : > { %p677_p11 = por %p676_p10, %p675_p9 }
 0x159   : > { %p673_p8 = pneg %p672_p7 }
 0x15a   : > { %p679_p13 = por %p678_p12, %p677_p11 }
 0x15c   : > { %p680_p0 = pnand %p679_p13, %p673_p8 }
 0x15e   : > { %683 = shalt.err (!%p680_p0)
}
 0x15f   : > { %610 = dma.vmem_to_hbm [thread:$0]  (%p790_p5), %s890_s10, 16, %s888_s13, %s415_s14  }
 0x160 PF: > { %p616_p1 = scmp.ge.s32.totalorder %s718_s23, 2  ;;  %s439_s7 = sand.u32 1, %s706_s20  }
 0x161   : > { %s440_s8 = scalar_lea.sflag [#allocation4], %s439_s7 }
 0x162   : > { %p613_p2 = pnand %p616_p1, %p794_p6 }
 0x164   : > { %701 = dma.done.wait (!%p613_p2), %s440_s8, 16  }
 0x165   : > { %703 = vsyncadd (!%p613_p2), %s440_s8, 4294967280  ;;  %p16_p3 = scmp.ge.s32.totalorder %s778_s25, 4   ;;  %s940_s20 = smov %s710_s21 }
 0x166   : > { %s941_s21 = smov %s714_s22  ;;  %s942_s22 = smov %s788_s28 }
 0x167   : > { %s943_s23 = smov %s778_s25  ;;  %18 = sbr.rel (!%p16_p3) target bundleno = 5 (0x5), region = 75 }
 0x16e   :  { %444 = vsyncpa [#allocation4], 1 }
 0x16f   :  { %446 = vsyncpa [#allocation4 + $0x1], 1 }

</bundles_post_ra>
